<compile_context>
chip_gen: v7x
topology: tpu7x:2x2x1
jax: 0.10.0
libtpu: 0.0.40
codegen_flags: <defaults>
</compile_context>

<pallas_src>
import math
from functools import partial

import jax
import jax.numpy as jnp
from jax.experimental import pallas as pl
from jax.experimental.pallas import tpu as pltpu


def _mha_kernel(xq_ref, xk_ref, xv_ref,
                wq_ref, bq_ref, wk_ref, bk_ref, wv_ref, bv_ref,
                wp_ref, bp_ref,
                out_ref, *, n_heads, head_dim):
    """One grid step: x*_ref are (block_b, D, L) channel-major blocks (bf16),
    weights are (D, D) bf16, biases are (D, 1) f32, out_ref is (block_b, D, L) f32."""
    blk_b, D, L = xq_ref.shape
    G = blk_b * n_heads
    f32 = jnp.float32
    bf16 = jnp.bfloat16

    def project(x_ref, w_ref, b_ref):
        # W(D_out, D_in) @ x(b, D_in, L): standard batched matmul 'bdc,bcl->bdl'
        # with the weight broadcast over the (small) batch block.
        w = jnp.broadcast_to(w_ref[...], (blk_b, D, D))               # bf16
        y = jnp.einsum('bdc,bcl->bdl', w, x_ref[...],
                       preferred_element_type=f32)                    # (b, D, L) f32
        return y + b_ref[...]                                         # (D,1) bias bcast

    q = project(xq_ref, wq_ref, bq_ref)   # 1/scale already folded into wq/bq
    k = project(xk_ref, wk_ref, bk_ref)
    v = project(xv_ref, wv_ref, bv_ref)

    # Head split on the sublane axis (Dh-row groups -> leading batch dim); with
    # head_dim a multiple of 8 this is a tile-aligned, relayout-free reshape.
    q = q.reshape(G, head_dim, L)
    k = k.reshape(G, head_dim, L)
    v = v.reshape(G, head_dim, L)

    # The single relayout in the kernel: Q per head to token-major so both
    # attention matmuls below are the standard / flash-style dot forms.
    qt = jnp.transpose(q, (0, 2, 1))                                   # (G, L, Dh)

    # scores = Q @ K  (already scaled via the folded Q projection)
    s = jnp.einsum('gqe,gek->gqk', qt.astype(bf16), k.astype(bf16),
                   preferred_element_type=f32)                         # (G, L, L)

    # numerically-stable softmax; reciprocal on the EUP slot.  Normalizing the
    # probabilities (rather than the context) keeps the per-token reciprocal
    # broadcasting along lanes, i.e. no extra relayout.
    m = jnp.max(s, axis=-1, keepdims=True)
    e = jnp.exp(s - m)
    denom = jnp.sum(e, axis=-1, keepdims=True)                         # (G, L, 1)
    p = e * pl.reciprocal(denom, approx=True)

    # Context stays channel-major: contraction over the key axis (minor of both).
    ctx = jnp.einsum('gek,gqk->geq', v.astype(bf16), p.astype(bf16),
                     preferred_element_type=f32)                       # (G, Dh, L)

    # Merge heads back onto the channel/sublane axis (free reshape) and apply the
    # output projection, still channel-major -> the result is already NCHW-ordered.
    ctx = ctx.reshape(blk_b, D, L)
    wp = jnp.broadcast_to(wp_ref[...], (blk_b, D, D))
    out = jnp.einsum('bdc,bcl->bdl', wp, ctx.astype(bf16),
                     preferred_element_type=f32) + bp_ref[...]

    # TODO(synk): with L < 128 (demo size) this store is lane-masked; at
    # production L >= 128 it is naturally lane-dense.  Flattening to (b, D*L)
    # here would require an in-kernel lane relayout costing what it saves.
    out_ref[...] = out.astype(out_ref.dtype)


def _pick_block_b(B, L):
    if B <= 1:
        return 1
    # Amortize per-step pipeline overhead (target block_b*L ~ 256) ...
    bb = max(1, min(B, max(1, 256 // max(L, 1))))
    # ... but keep >= 2 parallel grid steps so both v7x TensorCores get work.
    bb = min(bb, max(1, B // 2))
    # TODO(synk): pad B instead of degrading block_b for awkward batch sizes.
    while B % bb:
        bb -= 1
    return bb


@partial(jax.jit, static_argnames=("n_heads", "block_b"))
def multihead_attention_pallas(q, k, v, params, n_heads, block_b=None):
    """q, k, v: (B, C, H, W) NCHW (module's 4-D path) or (B, L, D).
    attn_mask / pos_token_dim not used (module defaults)."""
    in_shape = q.shape
    is_4d = (q.ndim == 4)
    if is_4d:
        B, C, H, W = q.shape
        L = H * W
        # NCHW -> (B, C, L): a free reshape, no HBM transpose.
        qc = q.reshape(B, C, L)
        kc = k.reshape(B, C, L)
        vc = v.reshape(B, C, L)
    else:
        B, L, C = q.shape
        qc = jnp.transpose(q, (0, 2, 1))
        kc = jnp.transpose(k, (0, 2, 1))
        vc = jnp.transpose(v, (0, 2, 1))

    D = C
    assert D % n_heads == 0
    head_dim = D // n_heads
    # PyTorch: / np.round(np.sqrt(head_dim), 2)  -- keep the rounding quirk.
    inv_scale = 1.0 / round(math.sqrt(head_dim), 2)

    wq, bq, wk, bk, wv, bv, wp, bp = params
    # Host-side prep (constant-folded under jit): fold 1/scale into the Q
    # projection, reshape biases for lane broadcast, cast MXU operands to bf16.
    bf16 = jnp.bfloat16
    f32 = jnp.float32
    wq_p = (wq * inv_scale).astype(bf16)
    bq_p = (bq * inv_scale).reshape(D, 1).astype(f32)
    wk_p = wk.astype(bf16); bk_p = bk.reshape(D, 1).astype(f32)
    wv_p = wv.astype(bf16); bv_p = bv.reshape(D, 1).astype(f32)
    wp_p = wp.astype(bf16); bp_p = bp.reshape(D, 1).astype(f32)
    qc = qc.astype(bf16); kc = kc.astype(bf16); vc = vc.astype(bf16)

    if block_b is None:
        block_b = _pick_block_b(B, L)
    grid = (B // block_b,)

    x_spec = pl.BlockSpec((block_b, D, L), lambda i: (i, 0, 0))
    # Constant block index -> fetched once and kept resident across grid steps.
    # TODO(synk): at production D, single-buffer the weights (pl.Buffered(1)) or
    # DMA them once into scratch to reclaim VMEM on v7x (64 MiB).
    w_spec = pl.BlockSpec((D, D), lambda i: (0, 0))
    b_spec = pl.BlockSpec((D, 1), lambda i: (0, 0))
    out_spec = pl.BlockSpec((block_b, D, L), lambda i: (i, 0, 0))

    kernel = partial(_mha_kernel, n_heads=n_heads, head_dim=head_dim)

    out_c = pl.pallas_call(
        kernel,
        out_shape=jax.ShapeDtypeStruct((B, D, L), f32),
        grid=grid,
        in_specs=[x_spec, x_spec, x_spec,
                  w_spec, b_spec, w_spec, b_spec, w_spec, b_spec,
                  w_spec, b_spec],
        out_specs=out_spec,
        compiler_params=pltpu.CompilerParams(
            dimension_semantics=("parallel",),
            # Not binding at demo size; raise toward ~100 MiB on v6e (128 MiB
            # physical) and re-derive for v7x (64 MiB) when scaling L / D.
            vmem_limit_bytes=32 * 1024 * 1024),
    )(qc, kc, vc, wq_p, bq_p, wk_p, bk_p, wv_p, bv_p, wp_p, bp_p)

    if is_4d:
        return out_c.reshape(in_shape)           # (B, C, L) -> NCHW: free
    return jnp.transpose(out_c, (0, 2, 1))


def multihead_attention_ref(q, k, v, params, n_heads):
    """Pure-JAX f32 reference mirroring the PyTorch forward (no mask, pos_token_dim=0)."""
    in_shape = q.shape
    if q.ndim == 4:
        B, C, H, W = q.shape
        q = jnp.transpose(q.reshape(B, C, H * W), (0, 2, 1))
        k = jnp.transpose(k.reshape(B, C, H * W), (0, 2, 1))
        v = jnp.transpose(v.reshape(B, C, H * W), (0, 2, 1))
    B, L, D = q.shape
    head_dim = D // n_heads
    scale = round(math.sqrt(head_dim), 2)
    wq, bq, wk, bk, wv, bv, wp, bp = params
    Q = (q @ wq.T + bq).reshape(B, L, n_heads, head_dim).transpose(0, 2, 1, 3)
    K = (k @ wk.T + bk).reshape(B, L, n_heads, head_dim).transpose(0, 2, 1, 3)
    V = (v @ wv.T + bv).reshape(B, L, n_heads, head_dim).transpose(0, 2, 1, 3)
    s = jnp.einsum("bhqd,bhkd->bhqk", Q, K) / scale
    p = jax.nn.softmax(s, axis=-1)
    ctx = jnp.einsum("bhqk,bhkd->bhqd", p, V)
    ctx = ctx.transpose(0, 2, 1, 3).reshape(B, L, D)
    out = ctx @ wp.T + bp
    if len(in_shape) == 4:
        out = jnp.transpose(out, (0, 2, 1)).reshape(in_shape)
    return out


def init_params(key, input_dim):
    # Deterministic synthetic init (stand-in for weight_init in the repo).
    ks = jax.random.split(key, 8)
    std = 1.0 / math.sqrt(input_dim)
    def lin(kw, kb):
        w = jax.random.normal(kw, (input_dim, input_dim), jnp.float32) * std
        b = jax.random.normal(kb, (input_dim,), jnp.float32) * 0.01
        return w, b
    wq, bq = lin(ks[0], ks[1])
    wk, bk = lin(ks[2], ks[3])
    wv, bv = lin(ks[4], ks[5])
    wp, bp = lin(ks[6], ks[7])
    return (wq, bq, wk, bk, wv, bv, wp, bp)


if __name__ == "__main__":
    key = jax.random.PRNGKey(0)
    k_in, k_par = jax.random.split(key)

    # Small 4-D NCHW inputs: B=2, C=input_dim=32, H=W=4  (L = 16 tokens)
    B, C, H, W = 2, 32, 4, 4
    n_heads = 4
    kq, kk, kv = jax.random.split(k_in, 3)
    q = jax.random.normal(kq, (B, C, H, W), jnp.float32)
    k = jax.random.normal(kk, (B, C, H, W), jnp.float32)
    v = jax.random.normal(kv, (B, C, H, W), jnp.float32)

    params = init_params(k_par, C)

    out = multihead_attention_pallas(q, k, v, params, n_heads=n_heads)
    out = jax.block_until_ready(out)

    ref = multihead_attention_ref(q, k, v, params, n_heads)
    assert out.shape == (B, C, H, W)
    # bf16 MXU inputs + approx reciprocal -> looser tolerance than the f32 reference.
    assert jnp.allclose(out, ref, atol=5e-2, rtol=5e-2), "mismatch vs reference"

    print("KERNEL_OK")
</pallas_src>

<mosaic_0001>
module attributes {stable_mosaic.version = 11 : i64} {
  func.func @_mha_kernel(%arg0: i32, %arg1: memref<1x32x16xbf16, #tpu.memory_space<vmem>>, %arg2: memref<1x32x16xbf16, #tpu.memory_space<vmem>>, %arg3: memref<1x32x16xbf16, #tpu.memory_space<vmem>>, %arg4: memref<32x32xbf16, #tpu.memory_space<vmem>>, %arg5: memref<32x1xf32, #tpu.memory_space<vmem>>, %arg6: memref<32x32xbf16, #tpu.memory_space<vmem>>, %arg7: memref<32x1xf32, #tpu.memory_space<vmem>>, %arg8: memref<32x32xbf16, #tpu.memory_space<vmem>>, %arg9: memref<32x1xf32, #tpu.memory_space<vmem>>, %arg10: memref<32x32xbf16, #tpu.memory_space<vmem>>, %arg11: memref<32x1xf32, #tpu.memory_space<vmem>>, %arg12: memref<1x32x16xf32, #tpu.memory_space<vmem>>) attributes {dimension_semantics = [#tpu.dimension_semantics<parallel>], iteration_bounds = array<i64: 2>, scalar_prefetch = 0 : i64, scratch_operands = 0 : i64, tpu.core_type = #tpu.core_type<tc>, window_params = [{transform_indices = @transform_0, window_bounds = array<i64: 1, 32, 16>}, {transform_indices = @transform_1, window_bounds = array<i64: 1, 32, 16>}, {transform_indices = @transform_2, window_bounds = array<i64: 1, 32, 16>}, {pipeline_mode = #tpu.pipeline_mode<synchronous>, transform_indices = @transform_3, window_bounds = array<i64: 32, 32>}, {pipeline_mode = #tpu.pipeline_mode<synchronous>, transform_indices = @transform_4, window_bounds = array<i64: 32, 1>}, {pipeline_mode = #tpu.pipeline_mode<synchronous>, transform_indices = @transform_5, window_bounds = array<i64: 32, 32>}, {pipeline_mode = #tpu.pipeline_mode<synchronous>, transform_indices = @transform_6, window_bounds = array<i64: 32, 1>}, {pipeline_mode = #tpu.pipeline_mode<synchronous>, transform_indices = @transform_7, window_bounds = array<i64: 32, 32>}, {pipeline_mode = #tpu.pipeline_mode<synchronous>, transform_indices = @transform_8, window_bounds = array<i64: 32, 1>}, {pipeline_mode = #tpu.pipeline_mode<synchronous>, transform_indices = @transform_9, window_bounds = array<i64: 32, 32>}, {pipeline_mode = #tpu.pipeline_mode<synchronous>, transform_indices = @transform_10, window_bounds = array<i64: 32, 1>}, {transform_indices = @transform_11, window_bounds = array<i64: 1, 32, 16>}]} {
    %c0 = arith.constant 0 : index
    %c0_0 = arith.constant 0 : index
    %0 = vector.load %arg4[%c0, %c0_0] : memref<32x32xbf16, #tpu.memory_space<vmem>>, vector<32x32xbf16>
    %1 = vector.shape_cast %0 : vector<32x32xbf16> to vector<1x32x32xbf16>
    %c0_1 = arith.constant 0 : index
    %c0_2 = arith.constant 0 : index
    %c0_3 = arith.constant 0 : index
    %2 = vector.load %arg1[%c0_1, %c0_2, %c0_3] : memref<1x32x16xbf16, #tpu.memory_space<vmem>>, vector<1x32x16xbf16>
    "tpu.trace_start"() <{level = 10 : i32, message = "bdc,bcl->bdl"}> : () -> ()
    %cst = arith.constant dense<0.000000e+00> : vector<1x32x16xf32>
    %3 = tpu.matmul %1, %2, %cst {dimension_numbers = #tpu.dot_dimension_numbers<[2], [1], [1], [2], [0, 0, 0, 1, 1, 2], [0], [0]>} : vector<1x32x32xbf16>, vector<1x32x16xbf16>, vector<1x32x16xf32> -> vector<1x32x16xf32>
    "tpu.trace_stop"() : () -> ()
    %c0_4 = arith.constant 0 : index
    %c0_5 = arith.constant 0 : index
    %4 = vector.load %arg5[%c0_4, %c0_5] : memref<32x1xf32, #tpu.memory_space<vmem>>, vector<32x1xf32>
    %5 = vector.shape_cast %4 : vector<32x1xf32> to vector<1x32x1xf32>
    %6 = vector.broadcast %5 : vector<1x32x1xf32> to vector<1x32x16xf32>
    %7 = arith.addf %3, %6 : vector<1x32x16xf32>
    %c0_6 = arith.constant 0 : index
    %c0_7 = arith.constant 0 : index
    %8 = vector.load %arg6[%c0_6, %c0_7] : memref<32x32xbf16, #tpu.memory_space<vmem>>, vector<32x32xbf16>
    %9 = vector.shape_cast %8 : vector<32x32xbf16> to vector<1x32x32xbf16>
    %c0_8 = arith.constant 0 : index
    %c0_9 = arith.constant 0 : index
    %c0_10 = arith.constant 0 : index
    %10 = vector.load %arg2[%c0_8, %c0_9, %c0_10] : memref<1x32x16xbf16, #tpu.memory_space<vmem>>, vector<1x32x16xbf16>
    "tpu.trace_start"() <{level = 10 : i32, message = "bdc,bcl->bdl"}> : () -> ()
    %cst_11 = arith.constant dense<0.000000e+00> : vector<1x32x16xf32>
    %11 = tpu.matmul %9, %10, %cst_11 {dimension_numbers = #tpu.dot_dimension_numbers<[2], [1], [1], [2], [0, 0, 0, 1, 1, 2], [0], [0]>} : vector<1x32x32xbf16>, vector<1x32x16xbf16>, vector<1x32x16xf32> -> vector<1x32x16xf32>
    "tpu.trace_stop"() : () -> ()
    %c0_12 = arith.constant 0 : index
    %c0_13 = arith.constant 0 : index
    %12 = vector.load %arg7[%c0_12, %c0_13] : memref<32x1xf32, #tpu.memory_space<vmem>>, vector<32x1xf32>
    %13 = vector.shape_cast %12 : vector<32x1xf32> to vector<1x32x1xf32>
    %14 = vector.broadcast %13 : vector<1x32x1xf32> to vector<1x32x16xf32>
    %15 = arith.addf %11, %14 : vector<1x32x16xf32>
    %c0_14 = arith.constant 0 : index
    %c0_15 = arith.constant 0 : index
    %16 = vector.load %arg8[%c0_14, %c0_15] : memref<32x32xbf16, #tpu.memory_space<vmem>>, vector<32x32xbf16>
    %17 = vector.shape_cast %16 : vector<32x32xbf16> to vector<1x32x32xbf16>
    %c0_16 = arith.constant 0 : index
    %c0_17 = arith.constant 0 : index
    %c0_18 = arith.constant 0 : index
    %18 = vector.load %arg3[%c0_16, %c0_17, %c0_18] : memref<1x32x16xbf16, #tpu.memory_space<vmem>>, vector<1x32x16xbf16>
    "tpu.trace_start"() <{level = 10 : i32, message = "bdc,bcl->bdl"}> : () -> ()
    %cst_19 = arith.constant dense<0.000000e+00> : vector<1x32x16xf32>
    %19 = tpu.matmul %17, %18, %cst_19 {dimension_numbers = #tpu.dot_dimension_numbers<[2], [1], [1], [2], [0, 0, 0, 1, 1, 2], [0], [0]>} : vector<1x32x32xbf16>, vector<1x32x16xbf16>, vector<1x32x16xf32> -> vector<1x32x16xf32>
    "tpu.trace_stop"() : () -> ()
    %c0_20 = arith.constant 0 : index
    %c0_21 = arith.constant 0 : index
    %20 = vector.load %arg9[%c0_20, %c0_21] : memref<32x1xf32, #tpu.memory_space<vmem>>, vector<32x1xf32>
    %21 = vector.shape_cast %20 : vector<32x1xf32> to vector<1x32x1xf32>
    %22 = vector.broadcast %21 : vector<1x32x1xf32> to vector<1x32x16xf32>
    %23 = arith.addf %19, %22 : vector<1x32x16xf32>
    %24 = vector.shape_cast %7 : vector<1x32x16xf32> to vector<4x8x16xf32>
    %25 = vector.shape_cast %15 : vector<1x32x16xf32> to vector<4x8x16xf32>
    %26 = vector.shape_cast %23 : vector<1x32x16xf32> to vector<4x8x16xf32>
    %27 = tpu.transpose %24, [0, 2, 1] : vector<4x8x16xf32> -> vector<4x16x8xf32>
    %28 = arith.truncf %27 : vector<4x16x8xf32> to vector<4x16x8xbf16>
    %29 = arith.truncf %25 : vector<4x8x16xf32> to vector<4x8x16xbf16>
    "tpu.trace_start"() <{level = 10 : i32, message = "gqe,gek->gqk"}> : () -> ()
    %cst_22 = arith.constant dense<0.000000e+00> : vector<4x16x16xf32>
    %30 = tpu.matmul %28, %29, %cst_22 {dimension_numbers = #tpu.dot_dimension_numbers<[2], [1], [1], [2], [0, 0, 0, 1, 1, 2], [0], [0]>} : vector<4x16x8xbf16>, vector<4x8x16xbf16>, vector<4x16x16xf32> -> vector<4x16x16xf32>
    "tpu.trace_stop"() : () -> ()
    %cst_23 = arith.constant dense<0xFF800000> : vector<4x16xf32>
    %31 = vector.multi_reduction <maximumf>, %30, %cst_23 [2] : vector<4x16x16xf32> to vector<4x16xf32>
    %32 = vector.shape_cast %31 : vector<4x16xf32> to vector<4x16x1xf32>
    %33 = vector.broadcast %32 : vector<4x16x1xf32> to vector<4x16x16xf32>
    %34 = arith.subf %30, %33 : vector<4x16x16xf32>
    %35 = math.exp %34 : vector<4x16x16xf32>
    %cst_24 = arith.constant dense<0.000000e+00> : vector<4x16xf32>
    %36 = vector.multi_reduction <add>, %35, %cst_24 [2] : vector<4x16x16xf32> to vector<4x16xf32>
    %37 = vector.shape_cast %36 : vector<4x16xf32> to vector<4x16x1xf32>
    %38 = tpu.reciprocal %37 {approx = true} : vector<4x16x1xf32> -> vector<4x16x1xf32>
    %39 = vector.broadcast %38 : vector<4x16x1xf32> to vector<4x16x16xf32>
    %40 = arith.mulf %35, %39 : vector<4x16x16xf32>
    %41 = arith.truncf %26 : vector<4x8x16xf32> to vector<4x8x16xbf16>
    %42 = arith.truncf %40 : vector<4x16x16xf32> to vector<4x16x16xbf16>
    "tpu.trace_start"() <{level = 10 : i32, message = "gek,gqk->geq"}> : () -> ()
    %cst_25 = arith.constant dense<0.000000e+00> : vector<4x8x16xf32>
    %43 = tpu.matmul %41, %42, %cst_25 {dimension_numbers = #tpu.dot_dimension_numbers<[2], [2], [1], [1], [0, 0, 0, 1, 1, 1], [0], [0]>} : vector<4x8x16xbf16>, vector<4x16x16xbf16>, vector<4x8x16xf32> -> vector<4x8x16xf32>
    "tpu.trace_stop"() : () -> ()
    %44 = vector.shape_cast %43 : vector<4x8x16xf32> to vector<1x32x16xf32>
    %c0_26 = arith.constant 0 : index
    %c0_27 = arith.constant 0 : index
    %45 = vector.load %arg10[%c0_26, %c0_27] : memref<32x32xbf16, #tpu.memory_space<vmem>>, vector<32x32xbf16>
    %46 = vector.shape_cast %45 : vector<32x32xbf16> to vector<1x32x32xbf16>
    %47 = arith.truncf %44 : vector<1x32x16xf32> to vector<1x32x16xbf16>
    "tpu.trace_start"() <{level = 10 : i32, message = "bdc,bcl->bdl"}> : () -> ()
    %cst_28 = arith.constant dense<0.000000e+00> : vector<1x32x16xf32>
    %48 = tpu.matmul %46, %47, %cst_28 {dimension_numbers = #tpu.dot_dimension_numbers<[2], [1], [1], [2], [0, 0, 0, 1, 1, 2], [0], [0]>} : vector<1x32x32xbf16>, vector<1x32x16xbf16>, vector<1x32x16xf32> -> vector<1x32x16xf32>
    "tpu.trace_stop"() : () -> ()
    %c0_29 = arith.constant 0 : index
    %c0_30 = arith.constant 0 : index
    %49 = vector.load %arg11[%c0_29, %c0_30] : memref<32x1xf32, #tpu.memory_space<vmem>>, vector<32x1xf32>
    %50 = vector.shape_cast %49 : vector<32x1xf32> to vector<1x32x1xf32>
    %51 = vector.broadcast %50 : vector<1x32x1xf32> to vector<1x32x16xf32>
    %52 = arith.addf %48, %51 : vector<1x32x16xf32>
    %c0_31 = arith.constant 0 : index
    %c0_32 = arith.constant 0 : index
    %c0_33 = arith.constant 0 : index
    %53 = vector.load %arg12[%c0_31, %c0_32, %c0_33] : memref<1x32x16xf32, #tpu.memory_space<vmem>>, vector<1x32x16xf32>
    tpu.vector_store %arg12[%c0_31, %c0_32, %c0_33], %52 {strides = array<i32>} : memref<1x32x16xf32, #tpu.memory_space<vmem>>, vector<1x32x16xf32>,
    return
  }
  func.func @transform_0(%arg0: i32) -> (i32, i32, i32) {
    %c0_i32 = arith.constant 0 : i32
    %c0_i32_0 = arith.constant 0 : i32
    %c0_i32_1 = arith.constant 0 : i32
    return %arg0, %c0_i32, %c0_i32_0 : i32, i32, i32
  }
  func.func @transform_1(%arg0: i32) -> (i32, i32, i32) {
    %c0_i32 = arith.constant 0 : i32
    %c0_i32_0 = arith.constant 0 : i32
    %c0_i32_1 = arith.constant 0 : i32
    return %arg0, %c0_i32, %c0_i32_0 : i32, i32, i32
  }
  func.func @transform_2(%arg0: i32) -> (i32, i32, i32) {
    %c0_i32 = arith.constant 0 : i32
    %c0_i32_0 = arith.constant 0 : i32
    %c0_i32_1 = arith.constant 0 : i32
    return %arg0, %c0_i32, %c0_i32_0 : i32, i32, i32
  }
  func.func @transform_3(%arg0: i32) -> (i32, i32) {
    %c0_i32 = arith.constant 0 : i32
    %c0_i32_0 = arith.constant 0 : i32
    %c0_i32_1 = arith.constant 0 : i32
    return %c0_i32, %c0_i32_0 : i32, i32
  }
  func.func @transform_4(%arg0: i32) -> (i32, i32) {
    %c0_i32 = arith.constant 0 : i32
    %c0_i32_0 = arith.constant 0 : i32
    %c0_i32_1 = arith.constant 0 : i32
    return %c0_i32, %c0_i32_0 : i32, i32
  }
  func.func @transform_5(%arg0: i32) -> (i32, i32) {
    %c0_i32 = arith.constant 0 : i32
    %c0_i32_0 = arith.constant 0 : i32
    %c0_i32_1 = arith.constant 0 : i32
    return %c0_i32, %c0_i32_0 : i32, i32
  }
  func.func @transform_6(%arg0: i32) -> (i32, i32) {
    %c0_i32 = arith.constant 0 : i32
    %c0_i32_0 = arith.constant 0 : i32
    %c0_i32_1 = arith.constant 0 : i32
    return %c0_i32, %c0_i32_0 : i32, i32
  }
  func.func @transform_7(%arg0: i32) -> (i32, i32) {
    %c0_i32 = arith.constant 0 : i32
    %c0_i32_0 = arith.constant 0 : i32
    %c0_i32_1 = arith.constant 0 : i32
    return %c0_i32, %c0_i32_0 : i32, i32
  }
  func.func @transform_8(%arg0: i32) -> (i32, i32) {
    %c0_i32 = arith.constant 0 : i32
    %c0_i32_0 = arith.constant 0 : i32
    %c0_i32_1 = arith.constant 0 : i32
    return %c0_i32, %c0_i32_0 : i32, i32
  }
  func.func @transform_9(%arg0: i32) -> (i32, i32) {
    %c0_i32 = arith.constant 0 : i32
    %c0_i32_0 = arith.constant 0 : i32
    %c0_i32_1 = arith.constant 0 : i32
    return %c0_i32, %c0_i32_0 : i32, i32
  }
  func.func @transform_10(%arg0: i32) -> (i32, i32) {
    %c0_i32 = arith.constant 0 : i32
    %c0_i32_0 = arith.constant 0 : i32
    %c0_i32_1 = arith.constant 0 : i32
    return %c0_i32, %c0_i32_0 : i32, i32
  }
  func.func @transform_11(%arg0: i32) -> (i32, i32, i32) {
    %c0_i32 = arith.constant 0 : i32
    %c0_i32_0 = arith.constant 0 : i32
    %c0_i32_1 = arith.constant 0 : i32
    return %arg0, %c0_i32, %c0_i32_0 : i32, i32, i32
  }
}

</mosaic_0001>

<bundles_post_ra>
// kernel: multihead_attention_pallas.1
= control target key start
LH: loop header
LB: loop body
LE: loop exit
PB: predicated region body
PF: predicated region fallthrough
CT: control target
= control target key end

     0   :  { %s1856_s17 = smov 0   ;;  %s2056_s0 = inlined_call_operand.vmem [shape: bf16[2,32,16], index: 0, kind: input, shape index: {}]   ;;  %s2057_s1 = inlined_call_operand.vmem [shape: bf16[2,32,16], index: 1, kind: input, shape index: {}]   ;;  %s2058_s2 = inlined_call_operand.vmem [shape: bf16[2,32,16], index: 2, kind: input, shape index: {}]   ;;  %s2059_s3 = inlined_call_operand.vmem [shape: bf16[32,32], index: 3, kind: input, shape index: {}]   ;;  %s2060_s4 = inlined_call_operand.vmem [shape: f32[32,1], index: 4, kind: input, shape index: {}]   ;;  %s2061_s5 = inlined_call_operand.vmem [shape: bf16[32,32], index: 5, kind: input, shape index: {}]   ;;  %s2062_s6 = inlined_call_operand.vmem [shape: f32[32,1], index: 6, kind: input, shape index: {}]   ;;  %s2063_s7 = inlined_call_operand.vmem [shape: bf16[32,32], index: 7, kind: input, shape index: {}]   ;;  %s2064_s8 = inlined_call_operand.vmem [shape: f32[32,1], index: 8, kind: input, shape index: {}]   ;;  %s2065_s9 = inlined_call_operand.vmem [shape: bf16[32,32], index: 9, kind: input, shape index: {}]   ;;  %s2066_s10 = inlined_call_operand.vmem [shape: f32[32,1], index: 10, kind: input, shape index: {}]   ;;  %s2067_s11 = inlined_call_operand.vmem [shape: f32[2,32,16], index: 11, kind: output, shape index: {}]  }
   0x1 LB: > { %s1541_s18 = sadd.s32 4294967295, %s1791_s17   ;;  %p1545_p0 = scmp.ge.s32.totalorder %s1791_s17, 1  ;;  %s1791_s17 = sphi %s1856_s17, %s21_s17  }
   0x2   : > { %p357_p1 = scmp.lt.s32.totalorder %s1791_s17, 3 }
   0x4   : > { %p358_p2 = pnand %p1545_p0, %p357_p1 }
   0x5   : > { %p407_p3 = scmp.lt.s32.totalorder (!%p358_p2), %s1541_s18, 1  ;;  %v1743_v0 = vld [vmem:[%s2059_s3] sm:$0xff] (!%p358_p2)   ;;  %vm482_vm0 = vcmask (!%p358_p2), 261120   ;;  %v1793_v2 = vmov (!%p358_p2), 0   ;;  %v438_v4 = vld [vmem:[%s2060_s4 + $0x10] sm:$0xff] (!%p358_p2)  ;;  %v437_v6 = vld [vmem:[%s2060_s4 + $0x8] sm:$0xff] (!%p358_p2) }
   0x6   : > { %361 = sbr.rel (%p358_p2) target bundleno = 1371 (0x55b), region = 64  ;;  %v1744_v1 = vld [vmem:[%s2061_s5] sm:$0xff] (!%p358_p2)   ;;  %1626 = vmatprep.mubr.msk.bf16.mxu0 (!%p358_p2), %vm482_vm0, %v1743_v0  ;;  %1713 = vset.pattern.permute.xlu0 (!%p358_p2), %v1793_v2  ;;  %v439_v8 = vld [vmem:[%s2060_s4 + $0x18] sm:$0xff] (!%p358_p2)  ;;  %v1745_v11 = vld [vmem:[%s2059_s3 + $0x8] sm:$0xff] (!%p358_p2)   ;;  %v1794_v18 = vmov (!%p358_p2), 0.0   ;;  %vm896_vm1 = vcmask (!%p358_p2), 1043456  }
   0x7   : > { %1634 = vmatprep.mubr.msk.bf16.mxu1 (!%p358_p2), %vm482_vm0, %v1744_v1  ;;  %v436_v3 = vld [vmem:[%s2060_s4] sm:$0xff] (!%p358_p2)  ;;  %1714 = vset.pattern.permute.xlu1 (!%p358_p2), %v1793_v2  ;;  %v1746_v13 = vld [vmem:[%s2061_s5 + $0x8] sm:$0xff] (!%p358_p2)   ;;  %v548_v15 = vld [vmem:[%s2062_s6 + $0x10] sm:$0xff] (!%p358_p2)  ;;  %vm1795_vm2 = vmmov (!%p358_p2), 0   ;;  %vm892_vm3 = vcmask (!%p358_p2), 64512   ;;  %vm1082_vm4 = vcmask (!%p358_p2), 130048  }
   0x8   : > { %442 = vperm.xlu0 (!%p358_p2), %1713, %v436_v3   ;;  %452 = vperm.xlu1 (!%p358_p2), %1714, %v438_v4   ;;  %v546_v12 = vld [vmem:[%s2062_s6] sm:$0xff] (!%p358_p2)  ;;  %v547_v14 = vld [vmem:[%s2062_s6 + $0x8] sm:$0xff] (!%p358_p2)  ;;  %v549_v16 = vld [vmem:[%s2062_s6 + $0x18] sm:$0xff] (!%p358_p2) }
   0x9   : > { %v1749_v20 = vld [vmem:[%s2063_s7] sm:$0xff] (!%p358_p2)   ;;  %v1750_v21 = vld [vmem:[%s2063_s7 + $0x8] sm:$0xff] (!%p358_p2)  }
   0xc   : > { %447 = vperm.xlu0 (!%p358_p2), %1713, %v437_v6   ;;  %457 = vperm.xlu1 (!%p358_p2), %1714, %v439_v8  }
   0xd   : > { %s2069_s18 = smov (!%p407_p3, %s1541_s18), 1 }
   0xe   : > { %s1875_s23 = sshll.u32 %s2069_s18, 4  ;;  %s1589_s27 = sshll.u32 %s2069_s18, 5 }
   0xf   : > { %s411_s28 = scalar_lea.vmem %s2056_s0, %s1875_s23  ;;  %s416_s12 = scalar_lea.vmem %s2057_s1, %s1875_s23 }
  0x10   : > { %v1739_v5 = vld [vmem:[%s411_s28] sm:$0xff]   ;;  %v1741_v9 = vld [vmem:[%s411_s28 + $0x8] sm:$0xff]   ;;  %552 = vperm.xlu0 %1713, %v546_v12   ;;  %557 = vperm.xlu1 %1714, %v547_v14   ;;  %s421_s19 = scalar_lea.vmem %s2058_s2, %s1875_s23  ;;  %s426_s30 = scalar_lea.vmem %s2067_s11, %s1589_s27 }
  0x11   : > { %v1740_v7 = vld [vmem:[%s416_s12] sm:$0xff]   ;;  %1622 = vmatprep.subr.bf16.mxu0 %v1739_v5  ;;  %v1742_v10 = vld [vmem:[%s416_s12 + $0x8] sm:$0xff]  }
  0x12   : > { %1630 = vmatprep.subr.bf16.mxu1 %v1740_v7  ;;  %1623 = vmatpush3.bf16.msra.mxu0 %v1739_v5  ;;  %v1747_v17 = vld [vmem:[%s421_s19] sm:$0xff]   ;;  %v1748_v19 = vld [vmem:[%s421_s19 + $0x8] sm:$0xff]  }
  0x13   : > { %1631 = vmatpush3.bf16.msra.mxu1 %v1740_v7  ;;  %1624 = vmatprep.subr.bf16.mxu0 %v1741_v9 }
  0x14   : > { %1632 = vmatprep.subr.bf16.mxu1 %v1742_v10  ;;  %562 = vperm.xlu0 %1713, %v548_v15  }
  0x15   : > { %567 = vperm.xlu1 %1714, %v549_v16  }
  0x16   : > { %1625 = vmatpush3.bf16.msra.mxu0 %v1741_v9 }
  0x17   : > { %1633 = vmatpush3.bf16.msra.mxu1 %v1742_v10  ;;  %1638 = vmatprep.subr.bf16.mxu0 %v1747_v17 }
  0x18   : > { %1646 = vmatprep.subr.bf16.mxu1 %v1794_v18 }
  0x19   : > { %1627 = vmatmul.mubr.msk.bf16.vlgmr.msra.gmra.mrb[0].mxu0 %vm482_vm0, %v1745_v11 }
  0x1a   : > { %1635 = vmatmul.mubr.msk.bf16.vlgmr.msra.gmra.mrb[0].mxu1 %vm482_vm0, %v1746_v13  ;;  %1639 = vmatpush3.bf16.msra.mxu0 %v1747_v17 }
  0x1b   : > { %1640 = vmatprep.subr.bf16.mxu0 %v1748_v19  ;;  %1642 = vmatprep.mubr.msk.bf16.mxu0 %vm482_vm0, %v1749_v20 }
  0x1c   : > { %1648 = vmatprep.mubr.msk.bf16.mxu1 %vm1795_vm2, %v1794_v18 }
  0x1e   : > { %1641 = vmatpush3.bf16.msra.mxu0 %v1748_v19 }
  0x1f   : > { %1652 = vmatprep.subr.bf16.mxu0 %v1794_v18 }
  0x21   : > { %1643 = vmatmul.mubr.msk.bf16.vlgmr.msra.gmra.mrb[4].mxu0 %vm482_vm0, %v1750_v21 }
  0x22   : > { %1654 = vmatprep.mubr.msk.bf16.mxu0 %vm1795_vm2, %v1794_v18 }
  0x87   : > { %v443_v22 = vpop.permute.xlu0 %442  ;;  %v453_v23 = vpop.permute.xlu1 %452 }
  0x8b   : > { %v448_v24 = vpop.permute.xlu0 %447  ;;  %v458_v25 = vpop.permute.xlu1 %457 }
  0x8f   : > { %v553_v26 = vpop.permute.xlu0 %552  ;;  %v558_v27 = vpop.permute.xlu1 %557 }
  0x93   : > { %v563_v28 = vpop.permute.xlu0 %562 }
  0x94   : > { %v568_v30 = vpop.permute.xlu1 %567 }
  0xec   : > { %v1628_v29 = vpop.f32.mrb[0].mxu0 }
  0xed   : > { %v1636_v31 = vpop.f32.mrb[0].mxu1  ;;  %v523_v32 = vpop.f32.mrb[1].mxu0  ;;  %v532_v36 = vadd.f32 %v1628_v29, %v453_v23 }
  0xee   : > { %v641_v33 = vadd.f32 %v1636_v31, %v563_v28  ;;  %v632_v34 = vpop.f32.mrb[1].mxu1  ;;  %v1629_v35 = vpop.f32.mrb[2].mxu0  ;;  %v524_v42 = vadd.f32 %v523_v32, %v443_v22 }
  0xef   : > { %v633_v37 = vadd.f32 %v632_v34, %v553_v26  ;;  %v535_v38 = vadd.f32 %v1629_v35, %v458_v25  ;;  %v526_v39 = vpop.f32.mrb[3].mxu0  ;;  %v1637_v40 = vpop.f32.mrb[2].mxu1 }
  0xf0   : > { %v890_v41 = vpack.c.bf16 %v641_v33, %v641_v33  ;;  %v527_v43 = vadd.f32 %v526_v39, %v448_v24  ;;  %v644_v44 = vadd.f32 %v1637_v40, %v568_v30  ;;  %v635_v45 = vpop.f32.mrb[3].mxu1 }
  0xf1   : > { %v888_v46 = vpack.c.bf16 %v633_v37, %v633_v37  ;;  %v1727_v47 = vpack.i.bf16 %v535_v38, %v532_v36  ;;  %v636_v48 = vadd.f32 %v635_v45, %v558_v27  ;;  %v655_v37 = vld [vmem:[%s2064_s8] sm:$0xff] }
  0xf2   : > { %v992_v49 = vsel %vm896_vm1, %v890_v41, 0  ;;  %v1715_v50 = vpack.i.bf16 %v527_v43, %v524_v42  ;;  %v891_v51 = vpack.c.bf16 %v644_v44, %v644_v44 }
  0xf3   : > { %v898_v52 = vsel %vm896_vm1, %v888_v46, 0  ;;  %1728 = vxpose.xlu1.b32.start.end [1/1] (short) (narrow) %v1727_v47, 16  ;;  %v889_v53 = vpack.c.bf16 %v636_v48, %v636_v48 }
  0xf4   : > { %1647 = vmatpush3.bf16.msra.mxu1 %v898_v52  ;;  %1716 = vxpose.xlu0.b32.start.end [1/1] (short) (narrow) %v1715_v50, 16  ;;  %v1039_v54 = vsel %vm896_vm1, %v891_v51, 0  ;;  %v1941_v56 = vpop.f32.mrb[4].mxu0 }
  0xf5   : > { %v945_v55 = vsel %vm896_vm1, %v889_v53, 0  ;;  %1658 = vmatprep.subr.bf16.mxu1 %v1794_v18  ;;  %v1943_v57 = vpop.f32.mrb[5].mxu0 }
  0xf6   : > { %1653 = vmatpush3.bf16.msra.mxu0 %v945_v55  ;;  %v1945_v58 = vpop.f32.mrb[6].mxu0 }
  0xf7   : > { %1664 = vmatprep.subr.bf16.mxu0 %v1794_v18  ;;  %v1947_v59 = vpop.f32.mrb[7].mxu0 }
 0x173   : > { %v1729_v60 = vpop.trf.xlu1 }
 0x174   : > { %v1717_v61 = vpop.trf.xlu0  ;;  %v1733_v6 = vunpack.i.h.bf16 %v1729_v60  ;;  %v1730_v7 = vunpack.i.l.bf16 %v1729_v60 }
 0x175   : > { %v1721_v63 = vunpack.i.h.bf16 %v1717_v61  ;;  %v1718_v0 = vunpack.i.l.bf16 %v1717_v61 }
 0x177   : > { %v1734_v62 = vpop.trf.xlu1 }
 0x178   : > { %v1722_v1 = vpop.trf.xlu0  ;;  %v1738_v8 = vunpack.i.h.bf16 %v1734_v62  ;;  %v1735_v9 = vunpack.i.l.bf16 %v1734_v62 }
 0x179   : > { %v1726_v2 = vunpack.i.h.bf16 %v1722_v1  ;;  %v1723_v3 = vunpack.i.l.bf16 %v1722_v1 }
 0x17a   : > { %v886_v10 = vpack.c.bf16 %v1735_v9, %v1730_v7  ;;  %v887_v11 = vpack.c.bf16 %v1738_v8, %v1733_v6 }
 0x17b   : > { %v884_v4 = vpack.c.bf16 %v1723_v3, %v1718_v0  ;;  %v885_v5 = vpack.c.bf16 %v1726_v2, %v1721_v63 }
 0x17d   : > { %1649 = vmatmul.mubr.msk.bf16.vlgmr.msra.gmra.mrb[4].mxu1 %vm892_vm3, %v884_v4  ;;  %1655 = vmatmul.mubr.msk.bf16.vlgmr.msra.gmra.mrb[8].mxu0 %vm892_vm3, %v885_v5 }
 0x17e   : > { %1659 = vmatpush3.bf16.msra.mxu1 %v992_v49  ;;  %1665 = vmatpush3.bf16.msra.mxu0 %v1039_v54 }
 0x17f   : > { %1660 = vmatprep.mubr.msk.bf16.mxu1 %vm1795_vm2, %v1794_v18  ;;  %1666 = vmatprep.mubr.msk.bf16.mxu0 %vm1795_vm2, %v1794_v18 }
 0x180   : > { %1670 = vmatprep.subr.bf16.mxu1 %v1794_v18  ;;  %1676 = vmatprep.subr.bf16.mxu0 %v1794_v18 }
 0x185   : > { %1661 = vmatmul.mubr.msk.bf16.vlgmr.msra.gmra.mrb[8].mxu1 %vm892_vm3, %v886_v10  ;;  %1667 = vmatmul.mubr.msk.bf16.vlgmr.msra.gmra.mrb[12].mxu0 %vm892_vm3, %v887_v11 }
 0x186   : > { %1672 = vmatprep.mubr.msk.bf16.mxu1 %vm1795_vm2, %v1794_v18  ;;  %1678 = vmatprep.mubr.msk.bf16.mxu0 %vm1795_vm2, %v1794_v18 }
 0x250   : > { %v934_v12 = vpop.f32.mrb[4].mxu1  ;;  %v981_v13 = vpop.f32.mrb[8].mxu0 }
 0x251   : > { %v1650_v14 = vpop.f32.mrb[5].mxu1  ;;  %v1656_v15 = vpop.f32.mrb[9].mxu0  ;;  %v1083_v16 = vsel %vm1082_vm4, %v934_v12, -inf  ;;  %v1089_v23 = vsel %vm1082_vm4, %v981_v13, -inf }
 0x252   : > { %v984_v17 = vpop.f32.mrb[10].mxu0  ;;  %1084 = vmax.xlane.f32.xlu0 %v1083_v16  ;;  %v937_v19 = vpop.f32.mrb[6].mxu1 }
 0x253   : > { %v1651_v20 = vpop.f32.mrb[7].mxu1  ;;  %v1657_v21 = vpop.f32.mrb[11].mxu0  ;;  %v1086_v22 = vsel %vm1082_vm4, %v937_v19, -inf  ;;  %v1092_v28 = vsel %vm1082_vm4, %v984_v17, -inf }
 0x254   : > { %1087 = vmax.xlane.f32.xlu1 %v1086_v22  ;;  %v658_v20 = vld [vmem:[%s2064_s8 + $0x18] sm:$0xff]  ;;  %v1370_v21 = vld [vmem:[%s2066_s10 + $0x8] sm:$0xff] }
 0x255   : > { %v656_v22 = vld [vmem:[%s2064_s8 + $0x8] sm:$0xff] }
 0x256   : > { %1090 = vmax.xlane.f32.xlu0 %v1089_v23  ;;  %v1372_v23 = vld [vmem:[%s2066_s10 + $0x18] sm:$0xff] }
 0x258   : > { %v1028_v24 = vpop.f32.mrb[8].mxu1  ;;  %v1075_v25 = vpop.f32.mrb[12].mxu0 }
 0x259   : > { %v1662_v26 = vpop.f32.mrb[9].mxu1  ;;  %v1668_v27 = vpop.f32.mrb[13].mxu0  ;;  %v1095_v29 = vsel %vm1082_vm4, %v1028_v24, -inf  ;;  %v1101_v34 = vsel %vm1082_vm4, %v1075_v25, -inf }
 0x25a   : > { %v1078_v30 = vpop.f32.mrb[14].mxu0  ;;  %1093 = vmax.xlane.f32.xlu0 %v1092_v28  ;;  %1096 = vmax.xlane.f32.xlu1 %v1095_v29  ;;  %v1031_v31 = vpop.f32.mrb[10].mxu1 }
 0x25b   : > { %v1663_v32 = vpop.f32.mrb[11].mxu1  ;;  %v1669_v33 = vpop.f32.mrb[15].mxu0  ;;  %v1098_v35 = vsel %vm1082_vm4, %v1031_v31, -inf  ;;  %v1104_v36 = vsel %vm1082_vm4, %v1078_v30, -inf }
 0x25e   : > { %1102 = vmax.xlane.f32.xlu1 %v1101_v34  ;;  %1099 = vmax.xlane.f32.xlu0 %v1098_v35 }
 0x262   : > { %1105 = vmax.xlane.f32.xlu0 %v1104_v36 }
 0x26f   : > { %661 = vperm.xlu1 %1714, %v655_v37  }
 0x2df   : > { %v1085_v38 = vpop.xlane.xlu0 %1084 }
 0x2e0   : > { %v1107_v39 = vsub.f32 %v934_v12, %v1085_v38 }
 0x2e1   : > { %v1088_v40 = vpop.xlane.xlu1 %1087 }
 0x2e2   : > { %v1115_v41 = vmul.f32 1.442695, %v1107_v39  ;;  %v1108_v42 = vsub.f32 %v937_v19, %v1088_v40  ;;  %v657_v19 = vld [vmem:[%s2064_s8 + $0x10] sm:$0xff] }
 0x2e3   : > { %v1091_v43 = vpop.xlane.xlu0 %1090 }
 0x2e4   : > { %1753 = vpow2.f32 %v1115_v41  ;;  %v1117_v44 = vmul.f32 1.442695, %v1108_v42  ;;  %v1109_v45 = vsub.f32 %v981_v13, %v1091_v43 }
 0x2e6   : > { %1755 = vpow2.f32 %v1117_v44  ;;  %v1119_v46 = vmul.f32 1.442695, %v1109_v45 }
 0x2e7   : > { %v1094_v47 = vpop.xlane.xlu0 %1093  ;;  %v1097_v48 = vpop.xlane.xlu1 %1096 }
 0x2e8   : > { %1757 = vpow2.f32 %v1119_v46  ;;  %v1110_v49 = vsub.f32 %v984_v17, %v1094_v47  ;;  %v1111_v50 = vsub.f32 %v1028_v24, %v1097_v48  ;;  %v1369_v24 = vld [vmem:[%s2066_s10] sm:$0xff] }
 0x2ea   : > { %v1121_v51 = vmul.f32 1.442695, %v1110_v49  ;;  %v1123_v52 = vmul.f32 1.442695, %v1111_v50 }
 0x2eb   : > { %v1103_v53 = vpop.xlane.xlu1 %1102  ;;  %v1100_v54 = vpop.xlane.xlu0 %1099 }
 0x2ec   : > { %1759 = vpow2.f32 %v1121_v51  ;;  %v1113_v55 = vsub.f32 %v1075_v25, %v1103_v53  ;;  %v1112_v60 = vsub.f32 %v1031_v31, %v1100_v54  ;;  %v1371_v25 = vld [vmem:[%s2066_s10 + $0x10] sm:$0xff] }
 0x2ed   : > { %1761 = vpow2.f32 %v1123_v52 }
 0x2ee   : > { %v1754_v61 = vpop.eup %1753  ;;  %v1127_v62 = vmul.f32 1.442695, %v1113_v55  ;;  %v1125_v63 = vmul.f32 1.442695, %v1112_v60 }
 0x2ef   : > { %v1106_v0 = vpop.xlane.xlu0 %1105  ;;  %v1131_v1 = vsel %vm1082_vm4, %v1754_v61, 0.0  ;;  %v662_v26 = vpop.permute.xlu1 %661 }
 0x2f0   : > { %v1756_v2 = vpop.eup %1755  ;;  %1763 = vpow2.f32 %v1127_v62  ;;  %v1114_v3 = vsub.f32 %v1078_v30, %v1106_v0  ;;  %1132 = vadd.xlane.f32.xlu1 %v1131_v1  ;;  %v742_v43 = vadd.f32 %v1943_v57, %v662_v26 }
 0x2f1   : > { %1765 = vpow2.f32 %v1125_v63  ;;  %v1134_v4 = vsel %vm1082_vm4, %v1756_v2, 0.0 }
 0x2f2   : > { %v1758_v5 = vpop.eup %1757  ;;  %v1129_v6 = vmul.f32 1.442695, %v1114_v3  ;;  %1135 = vadd.xlane.f32.xlu0 %v1134_v4  ;;  %v1171_v48 = vpack.c.bf16 %v742_v43, %v742_v43 }
 0x2f3   : > { %v1137_v7 = vsel %vm1082_vm4, %v1758_v5, 0.0 }
 0x2f4   : > { %1767 = vpow2.f32 %v1129_v6  ;;  %1138 = vadd.xlane.f32.xlu1 %v1137_v7 }
 0x2f6   : > { %v1760_v8 = vpop.eup %1759 }
 0x2f7   : > { %v1977_v9 = vpop.eup %1761  ;;  %v1140_v10 = vsel %vm1082_vm4, %v1760_v8, 0.0 }
 0x2f8   : > { %v1143_v11 = vsel %vm1082_vm4, %v1977_v9, 0.0  ;;  %1141 = vadd.xlane.f32.xlu0 %v1140_v10 }
 0x2f9   : > { %1144 = vadd.xlane.f32.xlu1 %v1143_v11 }
 0x2fa   : > { %v1982_v12 = vpop.eup %1763 }
 0x2fb   : > { %v1984_v13 = vpop.eup %1765  ;;  %v1149_v14 = vsel %vm1082_vm4, %v1982_v12, 0.0 }
 0x2fc   : > { %v1146_v15 = vsel %vm1082_vm4, %v1984_v13, 0.0 }
 0x2fd   : > { %1150 = vadd.xlane.f32.xlu1 %v1149_v14  ;;  %1147 = vadd.xlane.f32.xlu0 %v1146_v15 }
 0x2fe   : > { %v1990_v16 = vpop.eup %1767 }
 0x2ff   : > { %v1152_v17 = vsel %vm1082_vm4, %v1990_v16, 0.0 }
 0x301   : > { %1153 = vadd.xlane.f32.xlu0 %v1152_v17 }
 0x30e   : > { %671 = vperm.xlu1 %1714, %v657_v19  }
 0x312   : > { %676 = vperm.xlu1 %1714, %v658_v20  }
 0x316   : > { %1380 = vperm.xlu1 %1714, %v1370_v21  }
 0x317   : > { %666 = vperm.xlu0 %1713, %v656_v22  }
 0x31a   : > { %1390 = vperm.xlu1 %1714, %v1372_v23  }
 0x31b   : > { %1375 = vperm.xlu0 %1713, %v1369_v24  }
 0x31f   : > { %1385 = vperm.xlu0 %1713, %v1371_v25   ;;  %v1752_v25 = vld [vmem:[%s2065_s9 + $0x8] sm:$0xff]  }
 0x37d   : > { %v1133_v27 = vpop.xlane.xlu1 %1132 }
 0x37e   : > { %1769 = vrcp.f32 %v1133_v27 }
 0x37f   : > { %v1136_v28 = vpop.xlane.xlu0 %1135 }
 0x380   : > { %1771 = vrcp.f32 %v1136_v28 }
 0x381   : > { %v1139_v29 = vpop.xlane.xlu1 %1138 }
 0x382   : > { %1773 = vrcp.f32 %v1139_v29 }
 0x385   : > { %v1142_v30 = vpop.xlane.xlu0 %1141 }
 0x386   : > { %v1145_v31 = vpop.xlane.xlu1 %1144  ;;  %1775 = vrcp.f32 %v1142_v30 }
 0x387   : > { %1777 = vrcp.f32 %v1145_v31 }
 0x388   : > { %v1770_v32 = vpop.eup %1769 }
 0x389   : > { %v1163_v36 = vmul.f32 %v1770_v32, %v1754_v61 }
 0x38a   : > { %v1772_v33 = vpop.eup %1771  ;;  %v1151_v34 = vpop.xlane.xlu1 %1150 }
 0x38b   : > { %v1148_v35 = vpop.xlane.xlu0 %1147  ;;  %v1164_v37 = vmul.f32 %v1772_v33, %v1756_v2 }
 0x38c   : > { %1779 = vrcp.f32 %v1148_v35  ;;  %v1774_v39 = vpop.eup %1773 }
 0x38d   : > { %1781 = vrcp.f32 %v1151_v34  ;;  %v1175_v38 = vpack.c.bf16 %v1164_v37, %v1163_v36  ;;  %v1165_v44 = vmul.f32 %v1774_v39, %v1758_v5 }
 0x38e   : > { %v672_v53 = vpop.permute.xlu1 %671 }
 0x38f   : > { %v1154_v40 = vpop.xlane.xlu0 %1153  ;;  %v1183_v41 = vsel %vm1082_vm4, %v1175_v38, 0  ;;  %v750_v2 = vadd.f32 %v1941_v56, %v672_v53  ;;  %v1751_v56 = vld [vmem:[%s2065_s9] sm:$0xff]  }
 0x390   : > { %1783 = vrcp.f32 %v1154_v40  ;;  %v1776_v42 = vpop.eup %1775  ;;  %1671 = vmatpush3.bf16.xpose.msra.mxu1 %v1183_v41 }
 0x391   : > { %v1166_v45 = vmul.f32 %v1776_v42, %v1760_v8  ;;  %1682 = vmatprep.subr.bf16.mxu1 %v1794_v18  ;;  %v1778_v47 = vpop.eup %1777  ;;  %v1173_v6 = vpack.c.bf16 %v750_v2, %v750_v2 }
 0x392   : > { %v1167_v57 = vmul.f32 %v1778_v47, %v1977_v9  ;;  %v677_v3 = vpop.permute.xlu1 %676 }
 0x393   : > { %v1176_v46 = vpack.c.bf16 %v1166_v45, %v1165_v44  ;;  %v753_v5 = vadd.f32 %v1945_v58, %v677_v3 }
 0x395   : > { %v1229_v49 = vsel %vm1082_vm4, %v1176_v46, 0  ;;  %v1174_v7 = vpack.c.bf16 %v753_v5, %v753_v5 }
 0x396   : > { %v1780_v50 = vpop.eup %1779  ;;  %v667_v51 = vpop.permute.xlu0 %666  ;;  %1677 = vmatpush3.bf16.xpose.msra.mxu0 %v1229_v49 }
 0x397   : > { %v1782_v52 = vpop.eup %1781  ;;  %v745_v54 = vadd.f32 %v1947_v59, %v667_v51  ;;  %1673 = vmatmul.mubr.msk.bf16.vlgmr.msra.gmra.mrb[12].mxu1 %vm1082_vm4, %v1171_v48  ;;  %v1168_v55 = vmul.f32 %v1780_v50, %v1984_v13  ;;  %1688 = vmatprep.subr.bf16.mxu0 %v1794_v18  ;;  %v1381_v27 = vpop.permute.xlu1 %1380 }
 0x398   : > { %1684 = vmatprep.mubr.msk.bf16.mxu1 %vm1795_vm2, %v1794_v18  ;;  %v1169_v62 = vmul.f32 %v1782_v52, %v1982_v12 }
 0x399   : > { %v1177_v61 = vpack.c.bf16 %v1168_v55, %v1167_v57  ;;  %v1172_v0 = vpack.c.bf16 %v745_v54, %v745_v54 }
 0x39a   : > { %v1784_v60 = vpop.eup %1783  ;;  %v1376_v26 = vpop.permute.xlu0 %1375 }
 0x39b   : > { %v1170_v63 = vmul.f32 %v1784_v60, %v1990_v16  ;;  %v1275_v59 = vsel %vm1082_vm4, %v1177_v61, 0  ;;  %v1391_v32 = vpop.permute.xlu1 %1390 }
 0x39c   : > { %1683 = vmatpush3.bf16.xpose.msra.mxu1 %v1275_v59 }
 0x39d   : > { %v1178_v1 = vpack.c.bf16 %v1170_v63, %v1169_v62  ;;  %1679 = vmatmul.mubr.msk.bf16.vlgmr.msra.gmra.mrb[16].mxu0 %vm1082_vm4, %v1172_v0 }
 0x39e   : > { %1690 = vmatprep.mubr.msk.bf16.mxu0 %vm1795_vm2, %v1794_v18  ;;  %v1386_v28 = vpop.permute.xlu0 %1385 }
 0x39f   : > { %v1321_v4 = vsel %vm1082_vm4, %v1178_v1, 0 }
 0x3a0   : > { %1689 = vmatpush3.bf16.xpose.msra.mxu0 %v1321_v4 }
 0x3a3   : > { %1685 = vmatmul.mubr.msk.bf16.vlgmr.msra.gmra.mrb[16].mxu1 %vm1082_vm4, %v1173_v6 }
 0x3a4   : > { %1698 = vmatprep.mubr.msk.bf16.mxu1 %vm482_vm0, %v1751_v56 }
 0x3a7   : > { %1691 = vmatmul.mubr.msk.bf16.vlgmr.msra.gmra.mrb[20].mxu0 %vm1082_vm4, %v1174_v7 }
 0x46a   : > { %v1219_v8 = vpop.f32.mrb[12].mxu1 }
 0x46b   : > { %v1674_v9 = vpop.f32.mrb[13].mxu1 }
 0x46c   : > { %v1222_v10 = vpop.f32.mrb[14].mxu1 }
 0x46d   : > { %v1675_v11 = vpop.f32.mrb[15].mxu1 }
 0x470   : > { %v1265_v18 = vpop.f32.mrb[16].mxu0 }
 0x471   : > { %v1367_v12 = vpack.c.bf16 %v1265_v18, %v1219_v8  ;;  %v1680_v13 = vpop.f32.mrb[17].mxu0 }
 0x472   : > { %v1268_v58 = vpop.f32.mrb[18].mxu0 }
 0x473   : > { %v1681_v14 = vpop.f32.mrb[19].mxu0  ;;  %1694 = vmatprep.subr.bf16.mxu1 %v1367_v12 }
 0x474   : > { %1695 = vmatpush3.bf16.msra.mxu1 %v1367_v12 }
 0x476   : > { %v1311_v15 = vpop.f32.mrb[16].mxu1 }
 0x477   : > { %v1686_v16 = vpop.f32.mrb[17].mxu1 }
 0x478   : > { %v1314_v17 = vpop.f32.mrb[18].mxu1 }
 0x479   : > { %v1687_v19 = vpop.f32.mrb[19].mxu1 }
 0x47a   : > { %v1357_v20 = vpop.f32.mrb[20].mxu0 }
 0x47b   : > { %v1368_v21 = vpack.c.bf16 %v1357_v20, %v1311_v15  ;;  %v1692_v22 = vpop.f32.mrb[21].mxu0 }
 0x47c   : > { %v1360_v23 = vpop.f32.mrb[22].mxu0 }
 0x47d   : > { %v1693_v24 = vpop.f32.mrb[23].mxu0  ;;  %1696 = vmatprep.subr.bf16.mxu1 %v1368_v21 }
 0x47e   : > { %1697 = vmatpush3.bf16.msra.mxu1 %v1368_v21 }
 0x481   : > { %1699 = vmatmul.mubr.msk.bf16.vlgmr.msra.gmra.mrb[20].mxu1 %vm482_vm0, %v1752_v25 }
 0x554   : > { %v1700_v29 = vpop.f32.mrb[20].mxu1 }
 0x555   : > { %v1452_v30 = vadd.f32 %v1700_v29, %v1386_v28  ;;  %v1443_v31 = vpop.f32.mrb[21].mxu1 }
 0x556   : > { %v1444_v33 = vadd.f32 %v1443_v31, %v1376_v26  ;;  %v1701_v34 = vpop.f32.mrb[22].mxu1 }
 0x557   : > { %1460 = vst.msk [vmem:[%s426_s30 + $0x10] sm:$0xff] %vm1082_vm4, %v1452_v30  ;;  %v1455_v35 = vadd.f32 %v1701_v34, %v1391_v32  ;;  %v1446_v36 = vpop.f32.mrb[23].mxu1 }
 0x558   : > { %1458 = vst.msk [vmem:[%s426_s30] sm:$0xff] %vm1082_vm4, %v1444_v33  ;;  %v1447_v37 = vadd.f32 %v1446_v36, %v1381_v27 }
 0x559   : > { %1461 = vst.msk [vmem:[%s426_s30 + $0x18] sm:$0xff] %vm1082_vm4, %v1455_v35 }
 0x55a   : > { %1459 = vst.msk [vmem:[%s426_s30 + $0x8] sm:$0xff] %vm1082_vm4, %v1447_v37 }
 0x55b PF: > { %s21_s17 = sadd.s32 1, %s1791_s17  }
 0x55c   : > { %p18_p4 = scmp.ge.s32.totalorder %s21_s17, 4  }
 0x55e   :  { %20 = sbr.rel (!%p18_p4) target bundleno = 1 (0x1), region = 100 }

</bundles_post_ra>
